<compile_context>
chip_gen: v7x
topology: tpu7x:2x2x1
jax: 0.10.0
libtpu: 0.0.40
codegen_flags: <defaults>
</compile_context>

<pallas_src>
import functools

import jax
import jax.numpy as jnp
from jax.experimental import pallas as pl
from jax.experimental.pallas import tpu as pltpu

P_DROP = 0.8
KEEP_PROB = 1.0 - P_DROP                               # 0.2
KEEP_SCALE = 1.0 / KEEP_PROB                           # 5.0
KEEP_THRESH_U32 = int(round(KEEP_PROB * (1 << 32)))    # exact 32-bit threshold


def _hash_u32(x):
    """Cheap 32-bit integer mix (lowbias32-style) -> uniform pseudo-random bits."""
    x = x ^ (x >> jnp.uint32(16))
    x = x * jnp.uint32(0x7FEB352D)
    x = x ^ (x >> jnp.uint32(15))
    x = x * jnp.uint32(0x846CA68B)
    x = x ^ (x >> jnp.uint32(16))
    return x


def _fused_kernel(seed_ref, x_ref, w_ref, b_ref, o_ref):
    # seed_ref: SMEM scalar (prefetched); x_ref: (TILE_M, K); w_ref: (K, N);
    # b_ref: (1, N); o_ref: (TILE_M, N)
    tm, k = x_ref.shape

    # --- counter-based PRNG: unique id per element across the WHOLE array ----
    i = pl.program_id(0)
    row = jax.lax.broadcasted_iota(jnp.uint32, (tm, k), 0)
    col = jax.lax.broadcasted_iota(jnp.uint32, (tm, k), 1)
    row_base = (i * tm).astype(jnp.uint32)                  # global row offset
    elem_id = (row + row_base) * jnp.uint32(k) + col
    seed_u = seed_ref[0].astype(jnp.uint32) * jnp.uint32(0x9E3779B1)
    bits = _hash_u32(elem_id ^ seed_u)
    keep = bits < jnp.uint32(KEEP_THRESH_U32)                # P(keep) = 0.2

    # --- fused dropout + relu (relu commutes with the positive scale) --------
    x = x_ref[...].astype(jnp.float32)
    v2 = jnp.where(jnp.logical_and(keep, x > 0.0),
                   x * jnp.float32(KEEP_SCALE),
                   jnp.float32(0.0))

    # --- linear + relu --------------------------------------------------------
    y = jnp.dot(v2, w_ref[...].astype(jnp.float32),
                preferred_element_type=jnp.float32)
    y = y + b_ref[...]
    o_ref[...] = jnp.maximum(y, 0.0)


def _round_up(v, m):
    return ((v + m - 1) // m) * m


@functools.partial(jax.jit, static_argnames=("tile_m",))
def model_forward(x, w, b, seed, *, tile_m=2048):
    """x: (B, C, H, W) with W == w.shape[0].  w: (C, 8) (already transposed
    vs. torch's (8, C)).  b: (8,).  seed: python int / int32 scalar."""
    B, C, H, W = x.shape
    K, N = w.shape
    assert W == K
    M = B * C * H

    # Tile sizing: multiple of 8 sublanes, never bigger than (padded) M.
    tile_m = max(8, _round_up(min(tile_m, _round_up(M, 8)), 8))
    M_pad = _round_up(M, tile_m)
    grid_m = M_pad // tile_m

    x2d = x.reshape(M, W)                      # keep input dtype (bf16-friendly)
    if M_pad != M:
        x2d = jnp.pad(x2d, ((0, M_pad - M), (0, 0)))
    b2d = b.reshape(1, N).astype(jnp.float32)
    seed_arr = jnp.asarray([seed], dtype=jnp.int32)

    bytes_in = M_pad * K * x2d.dtype.itemsize + K * N * 4 + N * 4
    bytes_out = M_pad * N * 4
    cost = pl.CostEstimate(flops=2 * M_pad * K * N,
                           transcendentals=0,
                           bytes_accessed=bytes_in + bytes_out)

    out2d = pl.pallas_call(
        _fused_kernel,
        out_shape=jax.ShapeDtypeStruct((M_pad, N), jnp.float32),
        grid_spec=pltpu.PrefetchScalarGridSpec(
            num_scalar_prefetch=1,
            grid=(grid_m,),
            in_specs=[
                pl.BlockSpec((tile_m, K), lambda i, s: (i, 0)),   # x tile
                pl.BlockSpec((K, N), lambda i, s: (0, 0)),        # weight (resident)
                pl.BlockSpec((1, N), lambda i, s: (0, 0)),        # bias   (resident)
            ],
            out_specs=pl.BlockSpec((tile_m, N), lambda i, s: (i, 0)),
        ),
        compiler_params=pltpu.CompilerParams(
            dimension_semantics=("parallel",),   # megacore sharding on v7x
        ),
        cost_estimate=cost,
    )(seed_arr, x2d, w, b2d)

    return out2d[:M].reshape(B, C, H, N)


if __name__ == "__main__":
    key = jax.random.PRNGKey(0)
    kx, kw, kb = jax.random.split(key, 3)

    # Small shapes consistent with the module: last dim == C so Linear(in=C) works.
    B, C, H = 2, 32, 8
    out_features = 8
    x = jax.random.normal(kx, (B, C, H, C), dtype=jnp.float32)

    # Deterministic "Linear(in_features=C, out_features=8)" parameters
    # (stored as (C, 8), i.e. torch weight transposed).
    w_t = jax.random.normal(kw, (C, out_features), dtype=jnp.float32) * (1.0 / jnp.sqrt(C))
    bias = jax.random.normal(kb, (out_features,), dtype=jnp.float32) * 0.01

    # tile_m=128 -> grid of 4 tiles at this small size (exercises the pipeline
    # and the per-tile PRNG offsets).
    out = model_forward(x, w_t, bias, seed=1234, tile_m=128)
    jax.block_until_ready(out)

    assert out.shape == (B, C, H, out_features)
    assert bool(jnp.all(out >= 0.0))          # final relu -> non-negative
    assert bool(jnp.all(jnp.isfinite(out)))
    print("KERNEL_OK")
</pallas_src>

<mosaic_0001>
module attributes {stable_mosaic.version = 11 : i64} {
  func.func @_fused_kernel(%arg0: i32, %arg1: memref<1xi32, #tpu.memory_space<smem>>, %arg2: memref<128x32xf32, #tpu.memory_space<vmem>>, %arg3: memref<32x8xf32, #tpu.memory_space<vmem>>, %arg4: memref<1x8xf32, #tpu.memory_space<vmem>>, %arg5: memref<128x8xf32, #tpu.memory_space<vmem>>) attributes {dimension_semantics = [#tpu.dimension_semantics<parallel>], iteration_bounds = array<i64: 4>, scalar_prefetch = 1 : i64, scratch_operands = 0 : i64, tpu.core_type = #tpu.core_type<tc>, window_params = [{transform_indices = @transform_0, window_bounds = array<i64: 128, 32>}, {pipeline_mode = #tpu.pipeline_mode<synchronous>, transform_indices = @transform_1, window_bounds = array<i64: 32, 8>}, {pipeline_mode = #tpu.pipeline_mode<synchronous>, transform_indices = @transform_2, window_bounds = array<i64: 1, 8>}, {transform_indices = @transform_3, window_bounds = array<i64: 128, 8>}]} {
    %0 = tpu.iota {dimensions = array<i32: 0>} : vector<128x32xi32>
    %1 = tpu.iota {dimensions = array<i32: 1>} : vector<128x32xi32>
    %c128_i32 = arith.constant 128 : i32
    %2 = arith.muli %arg0, %c128_i32 : i32
    %3 = vector.broadcast %2 : i32 to vector<128x32xi32>
    %4 = arith.addi %0, %3 : vector<128x32xi32>
    %c32_i32 = arith.constant 32 : i32
    %5 = vector.broadcast %c32_i32 : i32 to vector<128x32xi32>
    %6 = arith.muli %4, %5 : vector<128x32xi32>
    %7 = arith.addi %6, %1 : vector<128x32xi32>
    %c0 = arith.constant 0 : index
    %8 = memref.load %arg1[%c0] : memref<1xi32, #tpu.memory_space<smem>>
    %c-1640531535_i32 = arith.constant -1640531535 : i32
    %9 = arith.muli %8, %c-1640531535_i32 : i32
    %10 = vector.broadcast %9 : i32 to vector<128x32xi32>
    %11 = arith.xori %7, %10 : vector<128x32xi32>
    %c16_i32 = arith.constant 16 : i32
    %12 = vector.broadcast %c16_i32 : i32 to vector<128x32xi32>
    %13 = arith.shrui %11, %12 : vector<128x32xi32>
    %14 = arith.xori %11, %13 : vector<128x32xi32>
    %c2146121005_i32 = arith.constant 2146121005 : i32
    %15 = vector.broadcast %c2146121005_i32 : i32 to vector<128x32xi32>
    %16 = arith.muli %14, %15 : vector<128x32xi32>
    %c15_i32 = arith.constant 15 : i32
    %17 = vector.broadcast %c15_i32 : i32 to vector<128x32xi32>
    %18 = arith.shrui %16, %17 : vector<128x32xi32>
    %19 = arith.xori %16, %18 : vector<128x32xi32>
    %c-2073254261_i32 = arith.constant -2073254261 : i32
    %20 = vector.broadcast %c-2073254261_i32 : i32 to vector<128x32xi32>
    %21 = arith.muli %19, %20 : vector<128x32xi32>
    %c16_i32_0 = arith.constant 16 : i32
    %22 = vector.broadcast %c16_i32_0 : i32 to vector<128x32xi32>
    %23 = arith.shrui %21, %22 : vector<128x32xi32>
    %24 = arith.xori %21, %23 : vector<128x32xi32>
    %c858993459_i32 = arith.constant 858993459 : i32
    %25 = vector.broadcast %c858993459_i32 : i32 to vector<128x32xi32>
    %26 = arith.cmpi ult, %24, %25 : vector<128x32xi32>
    %c0_1 = arith.constant 0 : index
    %c0_2 = arith.constant 0 : index
    %27 = vector.load %arg2[%c0_1, %c0_2] : memref<128x32xf32, #tpu.memory_space<vmem>>, vector<128x32xf32>
    %cst = arith.constant 0.000000e+00 : f32
    %28 = vector.broadcast %cst : f32 to vector<128x32xf32>
    %29 = arith.cmpf ogt, %27, %28 : vector<128x32xf32>
    %30 = arith.andi %26, %29 : vector<128x32xi1>
    %cst_3 = arith.constant 5.000000e+00 : f32
    %31 = vector.broadcast %cst_3 : f32 to vector<128x32xf32>
    %32 = arith.mulf %27, %31 : vector<128x32xf32>
    %cst_4 = arith.constant 0.000000e+00 : f32
    %33 = vector.broadcast %cst_4 : f32 to vector<128x32xf32>
    %34 = arith.select %30, %32, %33 : vector<128x32xi1>, vector<128x32xf32>
    %c0_5 = arith.constant 0 : index
    %c0_6 = arith.constant 0 : index
    %35 = vector.load %arg3[%c0_5, %c0_6] : memref<32x8xf32, #tpu.memory_space<vmem>>, vector<32x8xf32>
    %cst_7 = arith.constant dense<0.000000e+00> : vector<128x8xf32>
    %36 = tpu.matmul %34, %35, %cst_7 {dimension_numbers = #tpu.dot_dimension_numbers<[1], [0], [0], [1], [0, 0, 1, 1], [], []>} : vector<128x32xf32>, vector<32x8xf32>, vector<128x8xf32> -> vector<128x8xf32>
    %c0_8 = arith.constant 0 : index
    %c0_9 = arith.constant 0 : index
    %37 = vector.load %arg4[%c0_8, %c0_9] : memref<1x8xf32, #tpu.memory_space<vmem>>, vector<1x8xf32>
    %38 = vector.broadcast %37 : vector<1x8xf32> to vector<128x8xf32>
    %39 = arith.addf %36, %38 : vector<128x8xf32>
    %cst_10 = arith.constant 0.000000e+00 : f32
    %40 = vector.broadcast %cst_10 : f32 to vector<128x8xf32>
    %41 = arith.maximumf %39, %40 : vector<128x8xf32>
    %c0_11 = arith.constant 0 : index
    %c0_12 = arith.constant 0 : index
    %42 = vector.load %arg5[%c0_11, %c0_12] : memref<128x8xf32, #tpu.memory_space<vmem>>, vector<128x8xf32>
    tpu.vector_store %arg5[%c0_11, %c0_12], %41 {strides = array<i32>} : memref<128x8xf32, #tpu.memory_space<vmem>>, vector<128x8xf32>,
    return
  }
  func.func @transform_0(%arg0: i32, %arg1: memref<1xi32, #tpu.memory_space<smem>>) -> (i32, i32) {
    %c0_i32 = arith.constant 0 : i32
    %c0_i32_0 = arith.constant 0 : i32
    return %arg0, %c0_i32 : i32, i32
  }
  func.func @transform_1(%arg0: i32, %arg1: memref<1xi32, #tpu.memory_space<smem>>) -> (i32, i32) {
    %c0_i32 = arith.constant 0 : i32
    %c0_i32_0 = arith.constant 0 : i32
    %c0_i32_1 = arith.constant 0 : i32
    return %c0_i32, %c0_i32_0 : i32, i32
  }
  func.func @transform_2(%arg0: i32, %arg1: memref<1xi32, #tpu.memory_space<smem>>) -> (i32, i32) {
    %c0_i32 = arith.constant 0 : i32
    %c0_i32_0 = arith.constant 0 : i32
    %c0_i32_1 = arith.constant 0 : i32
    return %c0_i32, %c0_i32_0 : i32, i32
  }
  func.func @transform_3(%arg0: i32, %arg1: memref<1xi32, #tpu.memory_space<smem>>) -> (i32, i32) {
    %c0_i32 = arith.constant 0 : i32
    %c0_i32_0 = arith.constant 0 : i32
    return %arg0, %c0_i32 : i32, i32
  }
}

</mosaic_0001>

<bundles_post_ra>
// kernel: model_forward.1
= control target key start
LH: loop header
LB: loop body
LE: loop exit
PB: predicated region body
PF: predicated region fallthrough
CT: control target
= control target key end

     0   :  { %s1408_s0 = inlined_call_operand.<no memory space> [shape: s32[1], index: 0, kind: input, shape index: {}]   ;;  %s1409_s1 = inlined_call_operand.hbm [shape: f32[512,32], index: 1, kind: input, shape index: {}]   ;;  %s1410_s2 = inlined_call_operand.vmem [shape: f32[32,8], index: 2, kind: input, shape index: {}]   ;;  %s1411_s3 = inlined_call_operand.vmem [shape: f32[1,8], index: 3, kind: input, shape index: {}]   ;;  %s1412_s4 = inlined_call_operand.vmem [shape: f32[512,8], index: 4, kind: output, shape index: {}]  }
   0x1   :  { %9 = sst [smem:[#allocation3]] %s1408_s0 }
   0x2   :  { %10 = vsyncpa [#allocation5], 0 }
   0x3   :  { %12 = vsyncpa [#allocation5 + $0x1], 0  ;;  %s1046_s17 = smov 0   ;;  %s1048_s18 = smov 0  }
   0x4   :  { %s1050_s19 = smov 0   ;;  %s1052_s20 = smov 0  }
   0x5 LB: > { %s1065_s0 = sadd.s32 4294967295, %s1013_s20   ;;  %s1068_s21 = sadd.s32 1, %s1013_s20   ;;  %s1013_s20 = sphi %s1052_s20, %s1419_s20   ;;  %s1009_s19 = sphi %s1050_s19, %s1418_s19   ;;  %s1005_s18 = sphi %s1048_s18, %s1417_s18   ;;  %s1001_s17 = sphi %s1046_s17, %s1416_s17  }
   0x6   : > { %s22_s22 = ssub.s32 %s1013_s20, %s1068_s21  ;;  %s25_s23 = sadd.s32 1, %s1009_s19 }
   0x7   : > { %p23_p0 = scmp.eq.s32.totalorder %s22_s22, 0  ;;  %p32_p1 = scmp.ne.s32.totalorder %s1009_s19, %s1005_s18 }
   0x8   : > { %p33_p2 = scmp.eq.s32.totalorder %s1013_s20, 0  ;;  %p38_p3 = scmp.ne.s32.totalorder %s1005_s18, %s1001_s17 }
   0x9   : > { %s1078_s24 = scalar_select %p23_p0, %s1009_s19, %s25_s23  }
   0xa   : > { %p34_p4 = por %p33_p2, %p32_p1  ;;  %p39_p5 = scmp.eq.s32.totalorder %s1065_s0, 0 }
   0xb   : > { %p914_p6 = scmp.lt.s32.totalorder %s1013_s20, 4  ;;  %s136_s26 = sand.u32 1, %s1009_s19  }
   0xc   : > { %p1082_p7 = por %p39_p5, %p38_p3  ;;  %s816_s27 = sshll.u32 %s136_s26, 7 }
   0xd   : > { %s843_s28 = sshll.u32 %s1013_s20, 11  ;;  %s140_s6 = scalar_lea.vmem [#allocation4], %s816_s27 }
   0xe   : > { %s1091_s5 = scalar_lea.hbm %s1409_s1, %s843_s28  ;;  %s147_s7 = sshll.u32 %s140_s6, 4  ;;  %s1093_s7 = int_to_ptr.vmem [resolvable:$true] %s147_s7 }
   0xf   : > { %p1095_p8 = pnand %p914_p6, %p34_p4  ;;  %s1100_s9 = scalar_lea.sflag [#allocation5], %s136_s26 }
  0x10   : > { %s949_s10 = scalar_lea.hbm %s1091_s5, 2048  ;;  %s954_s13 = scalar_lea.hbm %s1409_s1, 8192 }
  0x11   : > { %p950_p10 = scmp.ne.s32.totalorder %s1091_s5, %s949_s10  ;;  %p951_p11 = pneg %p1095_p8 }
  0x12   : > { %p955_p0 = scmp.lt.u32.totalorder %s1091_s5, %s1409_s1  ;;  %p956_p1 = scmp.lt.u32.totalorder %s954_s13, %s949_s10 }
  0x13   : > { %p952_p12 = pnand %p951_p11, %p950_p10  ;;  %p958_p3 = scmp.lt.u32.totalorder %s949_s10, %s1091_s5 }
  0x14   : > { %p957_p2 = por %p956_p1, %p955_p0 }
  0x15   : > { %p953_p13 = pneg %p952_p12 }
  0x16   : > { %p959_p4 = por %p958_p3, %p957_p2 }
  0x18   : > { %p960_p5 = pnand %p959_p4, %p953_p13 }
  0x1a   : > { %963 = shalt.err (!%p960_p5)
}
  0x1b   : > { %s964_s16 = scalar_lea.vmem %s1093_s7, 2048  ;;  %s1015_s17 = smov [#allocation4]  }
  0x1c   : > { %p965_p6 = scmp.ne.s32.totalorder %s1093_s7, %s964_s16  ;;  %s969_s22 = sshll.u32 %s1015_s17, 4  ;;  %s970_s22 = int_to_ptr.vmem [resolvable:$false] %s969_s22 }
  0x1d   : > { %s971_s23 = scalar_lea.vmem %s970_s22, 4096  ;;  %p972_p9 = scmp.lt.s32.totalorder %s1093_s7, %s970_s22 }
  0x1e   : > { %p967_p10 = pnand %p965_p6, %p951_p11  ;;  %p973_p0 = scmp.lt.s32.totalorder %s971_s23, %s964_s16 }
  0x20   : > { %p968_p12 = pneg %p967_p10  ;;  %p974_p1 = por %p973_p0, %p972_p9 }
  0x22   : > { %p975_p2 = pnand %p974_p1, %p968_p12 }
  0x24   : > { %978 = shalt.err (!%p975_p2)
}
  0x25   : > { %s1016_s26 = smov 128   ;;  %s1017_s27 = smov 8  }
  0x26   : > { %913 = dma.hbm_to_vmem [thread:$0]  (!%p1095_p8), %s1091_s5, 2048, %s1093_s7, %s1100_s9, %s1016_s26, %s1016_s26, %s1017_s27  }
  0x27   : > { %p155_p11 = scmp.lt.s32.totalorder %s1013_s20, 5  ;;  %p1415_p13 = scmp.ge.s32.totalorder %s1013_s20, 1 }
  0x29   : > { %p156_p3 = pnand %p1415_p13, %p155_p11 }
  0x2a   : > { %s161_s28 = sand.u32 (!%p156_p3), 1, %s1005_s18  }
  0x2b   : > { %159 = sbr.rel (%p156_p3) target bundleno = 349 (0x15d), region = 32  ;;  %s820_s29 = sshll.u32 (!%p156_p3), %s161_s28, 7 }
  0x2c   : > { %s162_s30 = scalar_lea.sflag (!%p156_p3), [#allocation5], %s161_s28  ;;  %s1132_s6 = scalar_lea.vmem (!%p156_p3), [#allocation4], %s820_s29 }
  0x32   : > { %996 = dma.done.wait (%p1082_p7), %s162_s30, 2048  }
  0x33   : > { %998 = vsyncadd (%p1082_p7), %s162_s30, 4294965248  ;;  %v195_v0 = vlaneseq  ;;  %s823_s8 = sshll.u32 %s1065_s0, 7  ;;  %s264_s20 = sld [smem:[#allocation3]]  ;;  %v507_v13 = vld [vmem:[%s1410_s2] sm:$0xff]  ;;  %v508_v14 = vld [vmem:[%s1410_s2 + $0x8] sm:$0xff]  ;;  %vm518_vm1 = vcmask 261120  }
  0x34   : > { %v1139_v1 = vstv %s823_s8  ;;  %v509_v15 = vld [vmem:[%s1410_s2 + $0x10] sm:$0xff]  ;;  %v896_v18 = vpack.c.bf16 %v508_v14, %v507_v13  ;;  %v510_v19 = vld [vmem:[%s1410_s2 + $0x18] sm:$0xff]  ;;  %v1177_v30 = vld [vmem:[%s1132_s6] sm:$0xff]  ;;  %s821_s15 = sshll.u32 %s1065_s0, 4 }
  0x35   : > { %v1141_v2 = vshrl.u32 %v195_v0, 7  ;;  %v1143_v3 = vand.u32 127, %v195_v0  ;;  %v900_v23 = vpack.c.bf16 %v510_v19, %v509_v15  ;;  %v1182_v35 = vld [vmem:[%s1132_s6 + $0x8] sm:$0xff]  ;;  %v1187_v38 = vld [vmem:[%s1132_s6 + $0x40] sm:$0xff]  ;;  %v1192_v43 = vmul.f32 5.0, %v1177_v30  ;;  %v1208_v58 = vld [vmem:[%s1132_s6 + $0x10] sm:$0xff] }
  0x36   : > { %897 = vmatprep.subr.bf16.mxu0 %v896_v18  ;;  %904 = vmatprep.subr.bf16.mxu1 %v896_v18  ;;  %v1195_v46 = vmul.f32 5.0, %v1182_v35  ;;  %v1199_v49 = vld [vmem:[%s1132_s6 + $0x48] sm:$0xff]  ;;  %v1203_v53 = vmul.f32 5.0, %v1187_v38  ;;  %vm443_vm0 = vcmp.gt.f32.partialorder %v1177_v30, 0.0  ;;  %vm444_vm2 = vcmp.gt.f32.partialorder %v1182_v35, 0.0  ;;  %p190_p7 = scmp.lt.s32.totalorder %s821_s15, 63 }
  0x37   : > { %v216_v4 = vadd.s32 %v1139_v1, %v1141_v2  ;;  %v197_v5 = vadd.s32 8, %v1141_v2  ;;  %v204_v6 = vadd.s32 64, %v1141_v2  ;;  %v205_v7 = vadd.s32 72, %v1141_v2  ;;  %899 = vmatpush3.bf16.msra.mxu0 %v896_v18  ;;  %906 = vmatpush3.bf16.msra.mxu1 %v896_v18 }
  0x38   : > { %v198_v8 = vadd.s32 16, %v1141_v2  ;;  %v199_v12 = vadd.s32 24, %v1141_v2  ;;  %v206_v17 = vadd.s32 80, %v1141_v2  ;;  %v207_v26 = vadd.s32 88, %v1141_v2  ;;  %901 = vmatprep.subr.bf16.mxu0 %v900_v23  ;;  %905 = vmatprep.subr.bf16.mxu1 %v900_v23  ;;  %s1421_s15 = smov (!%p190_p7, %s821_s15), 63 }
  0x39   : > { %v232_v9 = vmul.u32 32, %v216_v4  ;;  %v217_v10 = vadd.s32 %v1139_v1, %v197_v5  ;;  %v224_v11 = vadd.s32 %v1139_v1, %v204_v6  ;;  %s265_s12 = smul.u32 2654435761, %s264_s20  ;;  %v225_v16 = vadd.s32 %v1139_v1, %v205_v7  ;;  %s822_s22 = sshll.u32 %s1421_s15, 3 }
  0x3a   : > { %v218_v25 = vadd.s32 %v1139_v1, %v198_v8  ;;  %v219_v29 = vadd.s32 %v1139_v1, %v199_v12  ;;  %v226_v36 = vadd.s32 %v1139_v1, %v206_v17  ;;  %v227_v41 = vadd.s32 %v1139_v1, %v207_v26  ;;  %s1346_s27 = scalar_lea.vmem %s1412_s4, %s822_s22 }
  0x3b   : > { %v248_v20 = vadd.s32 %v232_v9, %v1143_v3  ;;  %v233_v21 = vmul.u32 32, %v217_v10  ;;  %v240_v22 = vmul.u32 32, %v224_v11  ;;  %v1169_v24 = vstv %s265_s12  ;;  %903 = vmatpush3.bf16.msra.mxu0 %v900_v23  ;;  %907 = vmatpush3.bf16.msra.mxu1 %v900_v23 }
  0x3c   : > { %v241_v32 = vmul.u32 32, %v225_v16  ;;  %v234_v40 = vmul.u32 32, %v218_v25  ;;  %v1212_v62 = vmul.f32 5.0, %v1199_v49  ;;  %v1218_v9 = vmul.f32 5.0, %v1208_v58 }
  0x3d   : > { %v267_v27 = vxor.u32 %v1169_v24, %v248_v20  ;;  %v249_v28 = vadd.s32 %v233_v21, %v1143_v3  ;;  %v256_v31 = vadd.s32 %v240_v22, %v1143_v3  ;;  %v235_v45 = vmul.u32 32, %v219_v29 }
  0x3e   : > { %v257_v39 = vadd.s32 %v241_v32, %v1143_v3  ;;  %v250_v50 = vadd.s32 %v234_v40, %v1143_v3  ;;  %v242_v59 = vmul.u32 32, %v226_v36  ;;  %vm451_vm3 = vcmp.gt.f32.partialorder %v1187_v38, 0.0 }
  0x3f   : > { %v283_v33 = vshrl.u32 %v267_v27, 16  ;;  %v268_v34 = vxor.u32 %v1169_v24, %v249_v28  ;;  %v275_v37 = vxor.u32 %v1169_v24, %v256_v31  ;;  %v251_v54 = vadd.s32 %v235_v45, %v1143_v3 }
  0x40   : > { %v276_v48 = vxor.u32 %v1169_v24, %v257_v39  ;;  %v269_v57 = vxor.u32 %v1169_v24, %v250_v50  ;;  %v258_v6 = vadd.s32 %v242_v59, %v1143_v3  ;;  %v243_v18 = vmul.u32 32, %v227_v41 }
  0x41   : > { %v299_v42 = vxor.u32 %v283_v33, %v267_v27  ;;  %v284_v44 = vshrl.u32 %v268_v34, 16  ;;  %v291_v47 = vshrl.u32 %v275_v37, 16  ;;  %v270_v63 = vxor.u32 %v1169_v24, %v251_v54 }
  0x42   : > { %v292_v56 = vshrl.u32 %v276_v48, 16  ;;  %v285_v5 = vshrl.u32 %v269_v57, 16  ;;  %v277_v14 = vxor.u32 %v1169_v24, %v258_v6  ;;  %vm452_vm4 = vcmp.gt.f32.partialorder %v1199_v49, 0.0 }
  0x43   : > { %v315_v51 = vmul.u32 2146121005, %v299_v42  ;;  %v300_v52 = vxor.u32 %v284_v44, %v268_v34  ;;  %v307_v55 = vxor.u32 %v291_v47, %v275_v37  ;;  %v286_v10 = vshrl.u32 %v270_v63, 16 }
  0x44   : > { %v308_v4 = vxor.u32 %v292_v56, %v276_v48  ;;  %v301_v13 = vxor.u32 %v285_v5, %v269_v57  ;;  %v293_v22 = vshrl.u32 %v277_v14, 16  ;;  %v259_v27 = vadd.s32 %v243_v18, %v1143_v3  ;;  %v437_v5 = vld [vmem:[%s1132_s6 + $0x50] sm:$0xff] }
  0x45   : > { %v331_v60 = vshrl.u32 %v315_v51, 15  ;;  %v316_v61 = vmul.u32 2146121005, %v300_v52  ;;  %v323_v0 = vmul.u32 2146121005, %v307_v55  ;;  %v302_v17 = vxor.u32 %v286_v10, %v270_v63  ;;  %v430_v52 = vld [vmem:[%s1132_s6 + $0x18] sm:$0xff] }
  0x46   : > { %v324_v12 = vmul.u32 2146121005, %v308_v4  ;;  %v317_v21 = vmul.u32 2146121005, %v301_v13  ;;  %vm445_vm5 = vcmp.gt.f32.partialorder %v1208_v58, 0.0  ;;  %v309_v32 = vxor.u32 %v293_v22, %v277_v14 }
  0x47   : > { %v347_v7 = vxor.u32 %v331_v60, %v315_v51  ;;  %v332_v8 = vshrl.u32 %v316_v61, 15  ;;  %v339_v11 = vshrl.u32 %v323_v0, 15  ;;  %v318_v26 = vmul.u32 2146121005, %v302_v17 }
  0x48   : > { %v340_v20 = vshrl.u32 %v324_v12, 15  ;;  %v333_v31 = vshrl.u32 %v317_v21, 15  ;;  %v278_v37 = vxor.u32 %v1169_v24, %v259_v27  ;;  %v325_v42 = vmul.u32 2146121005, %v309_v32 }
  0x49   : > { %v363_v15 = vmul.u32 2221713035, %v347_v7  ;;  %v348_v16 = vxor.u32 %v332_v8, %v316_v61  ;;  %v355_v19 = vxor.u32 %v339_v11, %v323_v0  ;;  %v334_v36 = vshrl.u32 %v318_v26, 15 }
  0x4a   : > { %v356_v29 = vxor.u32 %v340_v20, %v324_v12  ;;  %v349_v41 = vxor.u32 %v333_v31, %v317_v21  ;;  %v294_v47 = vshrl.u32 %v278_v37, 16  ;;  %v341_v54 = vshrl.u32 %v325_v42, 15 }
  0x4b   : > { %v379_v23 = vshrl.u32 %v363_v15, 16  ;;  %v364_v25 = vmul.u32 2221713035, %v348_v16  ;;  %v371_v28 = vmul.u32 2221713035, %v355_v19  ;;  %v350_v45 = vxor.u32 %v334_v36, %v318_v26  ;;  %v438_v16 = vld [vmem:[%s1132_s6 + $0x58] sm:$0xff] }
  0x4c   : > { %v372_v40 = vmul.u32 2221713035, %v356_v29  ;;  %v365_v51 = vmul.u32 2221713035, %v349_v41  ;;  %v310_v57 = vxor.u32 %v294_v47, %v278_v37  ;;  %v357_v60 = vxor.u32 %v341_v54, %v325_v42  ;;  %v1266_v36 = vld [vmem:[%s1132_s6 + $0x20] sm:$0xff] }
  0x4d   : > { %v395_v33 = vxor.u32 %v379_v23, %v363_v15  ;;  %v380_v34 = vshrl.u32 %v364_v25, 16  ;;  %v387_v39 = vshrl.u32 %v371_v28, 16  ;;  %v366_v56 = vmul.u32 2221713035, %v350_v45 }
  0x4e   : > { %v388_v50 = vshrl.u32 %v372_v40, 16  ;;  %v381_v30 = vshrl.u32 %v365_v51, 16  ;;  %vm446_vm12 = vcmp.gt.f32.partialorder %v430_v52, 0.0  ;;  %v373_v4 = vmul.u32 2221713035, %v357_v60  ;;  %v1285_v60 = vld [vmem:[%s1132_s6 + $0x60] sm:$0xff] }
  0x4f   : > { %vm411_vm6 = vcmp.lt.u32.totalorder %v395_v33, 858993459  ;;  %v396_v44 = vxor.u32 %v380_v34, %v364_v25  ;;  %v403_v48 = vxor.u32 %v387_v39, %v371_v28  ;;  %v382_v63 = vshrl.u32 %v366_v56, 16 }
  0x50   : > { %vm459_vm7 = vmand %vm411_vm6, %vm443_vm0  ;;  %v404_v59 = vxor.u32 %v388_v50, %v372_v40  ;;  %v397_v35 = vxor.u32 %v381_v30, %v365_v51  ;;  %v478_v6 = vmul.f32 5.0, %v430_v52  ;;  %v200_v7 = vadd.s32 32, %v1141_v2 }
  0x51   : > { %v491_v55 = vsel %vm459_vm7, %v1192_v43, 0.0  ;;  %vm412_vm8 = vcmp.lt.u32.totalorder %v396_v44, 858993459  ;;  %vm419_vm10 = vcmp.lt.u32.totalorder %v403_v48, 858993459  ;;  %v389_v10 = vshrl.u32 %v373_v4, 16 }
  0x52   : > { %872 = vmatprep.mubr.msk.f32.mxu0 %vm518_vm1, %v491_v55  ;;  %vm460_vm9 = vmand %vm412_vm8, %vm444_vm2  ;;  %v326_v43 = vmul.u32 2146121005, %v310_v57  ;;  %vm420_vm13 = vcmp.lt.u32.totalorder %v404_v59, 858993459  ;;  %vm413_vm15 = vcmp.lt.u32.totalorder %v397_v35, 858993459  ;;  %v220_v49 = vadd.s32 %v1139_v1, %v200_v7 }
  0x53   : > { %v492_v61 = vsel %vm460_vm9, %v1195_v46, 0.0  ;;  %vm467_vm11 = vmand %vm419_vm10, %vm451_vm3  ;;  %v398_v46 = vxor.u32 %v382_v63, %v366_v56  ;;  %vm453_vm3 = vcmp.gt.f32.partialorder %v437_v5, 0.0  ;;  %v405_v12 = vxor.u32 %v389_v10, %v373_v4  ;;  %v1275_v48 = vld [vmem:[%s1132_s6 + $0x28] sm:$0xff] }
  0x54   : > { %873 = vmatmul.mubr.msk.f32.vlgmr.msra.gmra.mrb[0].mxu0 %vm518_vm1, %v492_v61  ;;  %v499_v0 = vsel %vm467_vm11, %v1203_v53, 0.0  ;;  %vm468_vm14 = vmand %vm420_vm13, %vm452_vm4  ;;  %v342_v38 = vshrl.u32 %v326_v43, 15  ;;  %v485_v13 = vmul.f32 5.0, %v437_v5  ;;  %v236_v58 = vmul.u32 32, %v220_v49 }
  0x55   : > { %884 = vmatprep.mubr.msk.f32.mxu1 %vm518_vm1, %v499_v0  ;;  %v500_v8 = vsel %vm468_vm14, %v1212_v62, 0.0  ;;  %vm461_vm0 = vmand %vm413_vm15, %vm445_vm5  ;;  %vm414_vm2 = vcmp.lt.u32.totalorder %v398_v46, 858993459  ;;  %v201_v62 = vadd.s32 40, %v1141_v2  ;;  %vm421_vm5 = vcmp.lt.u32.totalorder %v405_v12, 858993459 }
  0x56   : > { %885 = vmatmul.mubr.msk.f32.vlgmr.msra.gmra.mrb[0].mxu1 %vm518_vm1, %v500_v8  ;;  %v358_v53 = vxor.u32 %v342_v38, %v326_v43  ;;  %v493_v11 = vsel %vm461_vm0, %v1218_v9, 0.0  ;;  %vm462_vm4 = vmand %vm414_vm2, %vm446_vm12  ;;  %v208_v18 = vadd.s32 96, %v1141_v2  ;;  %v252_v19 = vadd.s32 %v236_v58, %v1143_v3  ;;  %v1300_v12 = vld [vmem:[%s1132_s6 + $0x68] sm:$0xff] }
  0x57   : > { %875 = vmatprep.mubr.msk.f32.mxu0 %vm518_vm1, %v493_v11  ;;  %v494_v14 = vsel %vm462_vm4, %v478_v6, 0.0  ;;  %v221_v17 = vadd.s32 %v1139_v1, %v201_v62  ;;  %vm469_vm6 = vmand %vm421_vm5, %vm453_vm3  ;;  %v209_v20 = vadd.s32 104, %v1141_v2  ;;  %vm454_vm7 = vcmp.gt.f32.partialorder %v438_v16, 0.0 }
  0x58   : > { %v374_v15 = vmul.u32 2221713035, %v358_v53  ;;  %876 = vmatmul.mubr.msk.f32.gmra.mrb[2].mxu0 %vm518_vm1, %v494_v14  ;;  %v501_v21 = vsel %vm469_vm6, %v485_v13, 0.0  ;;  %v228_v23 = vadd.s32 %v1139_v1, %v208_v18  ;;  %v486_v26 = vmul.f32 5.0, %v438_v16 }
  0x59   : > { %v237_v22 = vmul.u32 32, %v221_v17  ;;  %887 = vmatprep.mubr.msk.f32.mxu1 %vm518_vm1, %v501_v21  ;;  %v271_v27 = vxor.u32 %v1169_v24, %v252_v19  ;;  %v229_v28 = vadd.s32 %v1139_v1, %v209_v20  ;;  %v202_v32 = vadd.s32 48, %v1141_v2 }
  0x5a   : > { %v390_v9 = vshrl.u32 %v374_v15, 16  ;;  %v244_v31 = vmul.u32 32, %v228_v23  ;;  %v203_v41 = vadd.s32 56, %v1141_v2  ;;  %v1280_v55 = vmul.f32 5.0, %v1266_v36 }
  0x5b   : > { %v253_v29 = vadd.s32 %v237_v22, %v1143_v3  ;;  %v287_v33 = vshrl.u32 %v271_v27, 16  ;;  %v245_v34 = vmul.u32 32, %v229_v28  ;;  %v222_v40 = vadd.s32 %v1139_v1, %v202_v32 }
  0x5c   : > { %v406_v25 = vxor.u32 %v390_v9, %v374_v15  ;;  %v260_v39 = vadd.s32 %v244_v31, %v1143_v3  ;;  %v223_v52 = vadd.s32 %v1139_v1, %v203_v41  ;;  %v210_v57 = vadd.s32 112, %v1141_v2 }
  0x5d   : > { %v272_v37 = vxor.u32 %v1169_v24, %v253_v29  ;;  %v303_v44 = vxor.u32 %v287_v33, %v271_v27  ;;  %v261_v45 = vadd.s32 %v245_v34, %v1143_v3  ;;  %v238_v51 = vmul.u32 32, %v222_v40 }
  0x5e   : > { %vm422_vm8 = vcmp.lt.u32.totalorder %v406_v25, 858993459  ;;  %v279_v50 = vxor.u32 %v1169_v24, %v260_v39  ;;  %v239_v63 = vmul.u32 32, %v223_v52  ;;  %vm447_vm10 = vcmp.gt.f32.partialorder %v1266_v36, 0.0 }
  0x5f   : > { %vm470_vm9 = vmand %vm422_vm8, %vm454_vm7  ;;  %v288_v47 = vshrl.u32 %v272_v37, 16  ;;  %v319_v54 = vmul.u32 2146121005, %v303_v44  ;;  %v280_v56 = vxor.u32 %v1169_v24, %v261_v45  ;;  %v254_v61 = vadd.s32 %v238_v51, %v1143_v3 }
  0x60   : > { %v502_v42 = vsel %vm470_vm9, %v486_v26, 0.0  ;;  %v295_v30 = vshrl.u32 %v279_v50, 16  ;;  %v1290_v0 = vmul.f32 5.0, %v1275_v48  ;;  %v230_v4 = vadd.s32 %v1139_v1, %v210_v57 }
  0x61   : > { %888 = vmatmul.mubr.msk.f32.gmra.mrb[2].mxu1 %vm518_vm1, %v502_v42  ;;  %v304_v59 = vxor.u32 %v288_v47, %v272_v37  ;;  %v335_v43 = vshrl.u32 %v319_v54, 15  ;;  %v296_v35 = vshrl.u32 %v280_v56, 16  ;;  %v273_v6 = vxor.u32 %v1169_v24, %v254_v61 }
  0x62   : > { %v311_v46 = vxor.u32 %v295_v30, %v279_v50  ;;  %v255_v38 = vadd.s32 %v239_v63, %v1143_v3  ;;  %v1296_v8 = vmul.f32 5.0, %v1285_v60  ;;  %v246_v53 = vmul.u32 32, %v230_v4 }
  0x63   : > { %v320_v5 = vmul.u32 2146121005, %v304_v59  ;;  %v351_v7 = vxor.u32 %v335_v43, %v319_v54  ;;  %v312_v10 = vxor.u32 %v296_v35, %v280_v56  ;;  %vm448_vm11 = vcmp.gt.f32.partialorder %v1275_v48, 0.0  ;;  %v434_v35 = vld [vmem:[%s1132_s6 + $0x38] sm:$0xff] }
  0x64   : > { %v327_v11 = vmul.u32 2146121005, %v311_v46  ;;  %v289_v13 = vshrl.u32 %v273_v6, 16  ;;  %v274_v62 = vxor.u32 %v1169_v24, %v255_v38  ;;  %v262_v16 = vadd.s32 %v246_v53, %v1143_v3 }
  0x65   : > { %v336_v49 = vshrl.u32 %v320_v5, 15  ;;  %v367_v14 = vmul.u32 2221713035, %v351_v7  ;;  %v328_v15 = vmul.u32 2146121005, %v312_v10  ;;  %v211_v58 = vadd.s32 120, %v1141_v2 }
  0x66   : > { %v343_v18 = vshrl.u32 %v327_v11, 15  ;;  %vm455_vm12 = vcmp.gt.f32.partialorder %v1285_v60, 0.0  ;;  %v305_v9 = vxor.u32 %v289_v13, %v273_v6  ;;  %v290_v19 = vshrl.u32 %v274_v62, 16 }
  0x67   : > { %v352_v17 = vxor.u32 %v336_v49, %v320_v5  ;;  %v383_v20 = vshrl.u32 %v367_v14, 16  ;;  %v344_v21 = vshrl.u32 %v328_v15, 15  ;;  %vm456_vm13 = vcmp.gt.f32.partialorder %v1300_v12, 0.0  ;;  %v441_v49 = vld [vmem:[%s1132_s6 + $0x70] sm:$0xff] }
  0x68   : > { %v281_v22 = vxor.u32 %v1169_v24, %v262_v16  ;;  %v231_v23 = vadd.s32 %v1139_v1, %v211_v58  ;;  %v359_v26 = vxor.u32 %v343_v18, %v327_v11  ;;  %v321_v27 = vmul.u32 2146121005, %v305_v9  ;;  %v442_v58 = vld [vmem:[%s1132_s6 + $0x78] sm:$0xff] }
  0x69   : > { %v368_v25 = vmul.u32 2221713035, %v352_v17  ;;  %v306_v28 = vxor.u32 %v290_v19, %v274_v62  ;;  %v399_v29 = vxor.u32 %v383_v20, %v367_v14  ;;  %v360_v2 = vxor.u32 %v344_v21, %v328_v15  ;;  %v1340_v21 = vld [vmem:[%s1411_s3] ss:$0 sm:$0xff] }
  0x6a   : > { %v297_v31 = vshrl.u32 %v281_v22, 16  ;;  %v247_v32 = vmul.u32 32, %v231_v23  ;;  %v375_v34 = vmul.u32 2221713035, %v359_v26  ;;  %v337_v37 = vshrl.u32 %v321_v27, 15 }
  0x6b   : > { %v384_v33 = vshrl.u32 %v368_v25, 16  ;;  %v322_v39 = vmul.u32 2146121005, %v306_v28  ;;  %vm415_vm14 = vcmp.lt.u32.totalorder %v399_v29, 858993459  ;;  %v488_v30 = vmul.f32 5.0, %v1300_v12 }
  0x6c   : > { %v376_v40 = vmul.u32 2221713035, %v360_v2  ;;  %v313_v41 = vxor.u32 %v297_v31, %v281_v22  ;;  %v263_v42 = vadd.s32 %v247_v32, %v1143_v3  ;;  %vm463_vm15 = vmand %vm415_vm14, %vm447_vm10  ;;  %v391_v44 = vshrl.u32 %v375_v34, 16  ;;  %v433_v3 = vld [vmem:[%s1132_s6 + $0x30] sm:$0xff] }
  0x6d   : > { %v400_v1 = vxor.u32 %v384_v33, %v368_v25  ;;  %v353_v45 = vxor.u32 %v337_v37, %v321_v27  ;;  %v338_v47 = vshrl.u32 %v322_v39, 15  ;;  %v495_v50 = vsel %vm463_vm15, %v1280_v55, 0.0 }
  0x6e   : > { %v392_v51 = vshrl.u32 %v376_v40, 16  ;;  %v329_v52 = vmul.u32 2146121005, %v313_v41  ;;  %v282_v54 = vxor.u32 %v1169_v24, %v263_v42  ;;  %878 = vmatprep.mubr.msk.f32.mxu0 %vm518_vm1, %v495_v50  ;;  %v407_v56 = vxor.u32 %v391_v44, %v375_v34 }
  0x6f   : > { %vm416_vm0 = vcmp.lt.u32.totalorder %v400_v1, 858993459  ;;  %v369_v57 = vmul.u32 2221713035, %v353_v45  ;;  %v354_v59 = vxor.u32 %v338_v47, %v322_v39  ;;  %vm449_vm6 = vcmp.gt.f32.partialorder %v433_v3, 0.0 }
  0x70   : > { %vm464_vm2 = vmand %vm416_vm0, %vm448_vm11  ;;  %v408_v36 = vxor.u32 %v392_v51, %v376_v40  ;;  %v345_v61 = vshrl.u32 %v329_v52, 15  ;;  %v298_v55 = vshrl.u32 %v282_v54, 16  ;;  %vm423_vm3 = vcmp.lt.u32.totalorder %v407_v56, 858993459 }
  0x71   : > { %v496_v63 = vsel %vm464_vm2, %v1290_v0, 0.0  ;;  %v385_v24 = vshrl.u32 %v369_v57, 16  ;;  %v370_v43 = vmul.u32 2221713035, %v354_v59  ;;  %vm471_vm4 = vmand %vm423_vm3, %vm455_vm12  ;;  %v481_v46 = vmul.f32 5.0, %v433_v3 }
  0x72   : > { %879 = vmatmul.mubr.msk.f32.gmra.mrb[4].mxu0 %vm518_vm1, %v496_v63  ;;  %vm424_vm5 = vcmp.lt.u32.totalorder %v408_v36, 858993459  ;;  %v361_v48 = vxor.u32 %v345_v61, %v329_v52  ;;  %v314_v4 = vxor.u32 %v298_v55, %v282_v54  ;;  %v503_v5 = vsel %vm471_vm4, %v1296_v8, 0.0 }
  0x73   : > { %vm472_vm7 = vmand %vm424_vm5, %vm456_vm13  ;;  %v401_v0 = vxor.u32 %v385_v24, %v369_v57  ;;  %v386_v6 = vshrl.u32 %v370_v43, 16  ;;  %890 = vmatprep.mubr.msk.f32.mxu1 %vm518_vm1, %v503_v5  ;;  %vm450_vm9 = vcmp.gt.f32.partialorder %v434_v35, 0.0  ;;  %v482_v53 = vmul.f32 5.0, %v434_v35 }
  0x74   : > { %v504_v38 = vsel %vm472_vm7, %v488_v30, 0.0  ;;  %v377_v7 = vmul.u32 2221713035, %v361_v48  ;;  %v330_v60 = vmul.u32 2146121005, %v314_v4  ;;  %vm457_vm13 = vcmp.gt.f32.partialorder %v441_v49, 0.0 }
  0x75   : > { %891 = vmatmul.mubr.msk.f32.gmra.mrb[4].mxu1 %vm518_vm1, %v504_v38  ;;  %vm417_vm8 = vcmp.lt.u32.totalorder %v401_v0, 858993459  ;;  %v402_v10 = vxor.u32 %v386_v6, %v370_v43  ;;  %v489_v62 = vmul.f32 5.0, %v441_v49  ;;  %vm458_vm0 = vcmp.gt.f32.partialorder %v442_v58, 0.0 }
  0x76   : > { %vm465_vm10 = vmand %vm417_vm8, %vm449_vm6  ;;  %v393_v8 = vshrl.u32 %v377_v7, 16  ;;  %v346_v11 = vshrl.u32 %v330_v60, 15  ;;  %v490_v19 = vmul.f32 5.0, %v442_v58 }
  0x77   : > { %v497_v12 = vsel %vm465_vm10, %v481_v46, 0.0  ;;  %vm418_vm11 = vcmp.lt.u32.totalorder %v402_v10, 858993459 }
  0x78   : > { %881 = vmatprep.mubr.msk.f32.mxu0 %vm518_vm1, %v497_v12  ;;  %vm466_vm12 = vmand %vm418_vm11, %vm450_vm9  ;;  %v409_v13 = vxor.u32 %v393_v8, %v377_v7  ;;  %v362_v14 = vxor.u32 %v346_v11, %v330_v60 }
  0x79   : > { %v498_v15 = vsel %vm466_vm12, %v482_v53, 0.0 }
  0x7a   : > { %882 = vmatmul.mubr.msk.f32.gmra.mrb[6].mxu0 %vm518_vm1, %v498_v15  ;;  %vm425_vm14 = vcmp.lt.u32.totalorder %v409_v13, 858993459  ;;  %v378_v16 = vmul.u32 2221713035, %v362_v14 }
  0x7b   : > { %vm473_vm15 = vmand %vm425_vm14, %vm457_vm13 }
  0x7c   : > { %v505_v17 = vsel %vm473_vm15, %v489_v62, 0.0  ;;  %v394_v18 = vshrl.u32 %v378_v16, 16 }
  0x7d   : > { %893 = vmatprep.mubr.msk.f32.mxu1 %vm518_vm1, %v505_v17 }
  0x7e   : > { %v410_v9 = vxor.u32 %v394_v18, %v378_v16 }
  0x80   : > { %vm426_vm2 = vcmp.lt.u32.totalorder %v410_v9, 858993459 }
  0x81   : > { %vm474_vm3 = vmand %vm426_vm2, %vm458_vm0 }
  0x82   : > { %v506_v20 = vsel %vm474_vm3, %v490_v19, 0.0 }
  0x83   : > { %894 = vmatmul.mubr.msk.f32.gmra.mrb[6].mxu1 %vm518_vm1, %v506_v20  ;;  %vm728_vm1 = vcmask 64512  }
 0x127   : > { %v874_v22 = vpop.f32.mrb[0].mxu0 }
 0x128   : > { %v639_v23 = vadd.f32 %v874_v22, %v1340_v21  ;;  %v633_v25 = vpop.f32.mrb[1].mxu0 }
 0x129   : > { %v634_v26 = vadd.f32 %v1340_v21, %v633_v25  ;;  %v886_v28 = vpop.f32.mrb[0].mxu1 }
 0x12a   : > { %v713_v27 = vmax.f32 %v639_v23, 0.0  ;;  %v679_v2 = vadd.f32 %v886_v28, %v1340_v21  ;;  %v673_v31 = vpop.f32.mrb[1].mxu1 }
 0x12b   : > { %v712_v29 = vmax.f32 %v634_v26, 0.0  ;;  %v674_v32 = vadd.f32 %v1340_v21, %v673_v31  ;;  %v877_v34 = vpop.f32.mrb[2].mxu0 }
 0x12c   : > { %730 = vst.msk [vmem:[%s1346_s27 + $0x8] sm:$0xff] %vm728_vm1, %v713_v27  ;;  %v721_v33 = vmax.f32 %v679_v2, 0.0  ;;  %v649_v39 = vadd.f32 %v877_v34, %v1340_v21  ;;  %v643_v40 = vpop.f32.mrb[3].mxu0 }
 0x12d   : > { %729 = vst.msk [vmem:[%s1346_s27] sm:$0xff] %vm728_vm1, %v712_v29  ;;  %v720_v37 = vmax.f32 %v674_v32, 0.0  ;;  %v644_v41 = vadd.f32 %v1340_v21, %v643_v40 }
 0x12e   : > { %738 = vst.msk [vmem:[%s1346_s27 + $0x48] sm:$0xff] %vm728_vm1, %v721_v33  ;;  %v715_v42 = vmax.f32 %v649_v39, 0.0 }
 0x12f   : > { %737 = vst.msk [vmem:[%s1346_s27 + $0x40] sm:$0xff] %vm728_vm1, %v720_v37  ;;  %v714_v1 = vmax.f32 %v644_v41, 0.0 }
 0x130   : > { %732 = vst.msk [vmem:[%s1346_s27 + $0x18] sm:$0xff] %vm728_vm1, %v715_v42 }
 0x131   : > { %731 = vst.msk [vmem:[%s1346_s27 + $0x10] sm:$0xff] %vm728_vm1, %v714_v1 }
 0x134   : > { %v889_v44 = vpop.f32.mrb[2].mxu1 }
 0x135   : > { %v689_v45 = vadd.f32 %v889_v44, %v1340_v21  ;;  %v683_v47 = vpop.f32.mrb[3].mxu1 }
 0x136   : > { %v684_v50 = vadd.f32 %v1340_v21, %v683_v47 }
 0x137   : > { %v723_v51 = vmax.f32 %v689_v45, 0.0 }
 0x138   : > { %v722_v52 = vmax.f32 %v684_v50, 0.0 }
 0x139   : > { %740 = vst.msk [vmem:[%s1346_s27 + $0x58] sm:$0xff] %vm728_vm1, %v723_v51 }
 0x13a   : > { %739 = vst.msk [vmem:[%s1346_s27 + $0x50] sm:$0xff] %vm728_vm1, %v722_v52 }
 0x145   : > { %v880_v54 = vpop.f32.mrb[4].mxu0 }
 0x146   : > { %v659_v56 = vadd.f32 %v880_v54, %v1340_v21  ;;  %v653_v57 = vpop.f32.mrb[5].mxu0 }
 0x147   : > { %v654_v3 = vadd.f32 %v1340_v21, %v653_v57 }
 0x148   : > { %v717_v59 = vmax.f32 %v659_v56, 0.0  ;;  %v892_v36 = vpop.f32.mrb[4].mxu1 }
 0x149   : > { %v716_v30 = vmax.f32 %v654_v3, 0.0  ;;  %v699_v61 = vadd.f32 %v892_v36, %v1340_v21  ;;  %v693_v55 = vpop.f32.mrb[5].mxu1 }
 0x14a   : > { %734 = vst.msk [vmem:[%s1346_s27 + $0x28] sm:$0xff] %vm728_vm1, %v717_v59  ;;  %v694_v63 = vadd.f32 %v1340_v21, %v693_v55 }
 0x14b   : > { %733 = vst.msk [vmem:[%s1346_s27 + $0x20] sm:$0xff] %vm728_vm1, %v716_v30  ;;  %v725_v24 = vmax.f32 %v699_v61, 0.0 }
 0x14c   : > { %v724_v43 = vmax.f32 %v694_v63, 0.0 }
 0x14d   : > { %742 = vst.msk [vmem:[%s1346_s27 + $0x68] sm:$0xff] %vm728_vm1, %v725_v24  ;;  %v883_v35 = vpop.f32.mrb[6].mxu0 }
 0x14e   : > { %741 = vst.msk [vmem:[%s1346_s27 + $0x60] sm:$0xff] %vm728_vm1, %v724_v43  ;;  %v669_v48 = vadd.f32 %v883_v35, %v1340_v21  ;;  %v663_v4 = vpop.f32.mrb[7].mxu0 }
 0x14f   : > { %v664_v5 = vadd.f32 %v1340_v21, %v663_v4 }
 0x150   : > { %v719_v0 = vmax.f32 %v669_v48, 0.0 }
 0x151   : > { %v718_v46 = vmax.f32 %v664_v5, 0.0 }
 0x152   : > { %736 = vst.msk [vmem:[%s1346_s27 + $0x38] sm:$0xff] %vm728_vm1, %v719_v0 }
 0x153   : > { %735 = vst.msk [vmem:[%s1346_s27 + $0x30] sm:$0xff] %vm728_vm1, %v718_v46 }
 0x156   : > { %v895_v6 = vpop.f32.mrb[6].mxu1 }
 0x157   : > { %v709_v38 = vadd.f32 %v895_v6, %v1340_v21  ;;  %v703_v7 = vpop.f32.mrb[7].mxu1 }
 0x158   : > { %v704_v60 = vadd.f32 %v1340_v21, %v703_v7 }
 0x159   : > { %v727_v10 = vmax.f32 %v709_v38, 0.0 }
 0x15a   : > { %v726_v53 = vmax.f32 %v704_v60, 0.0 }
 0x15b   : > { %744 = vst.msk [vmem:[%s1346_s27 + $0x78] sm:$0xff] %vm728_vm1, %v727_v10 }
 0x15c   : > { %743 = vst.msk [vmem:[%s1346_s27 + $0x70] sm:$0xff] %vm728_vm1, %v726_v53 }
 0x15d PF: > { %p15_p8 = scmp.ge.s32.totalorder %s1068_s21, 6   ;;  %s1416_s17 = smov %s1005_s18 }
 0x15e   : > { %s1417_s18 = smov %s1009_s19  ;;  %s1418_s19 = smov %s1078_s24 }
 0x15f   : > { %s1419_s20 = smov %s1068_s21  ;;  %17 = sbr.rel (!%p15_p8) target bundleno = 5 (0x5), region = 72 }
 0x166   :  { %767 = vsyncpa [#allocation5], 1 }
 0x167   :  { %769 = vsyncpa [#allocation5 + $0x1], 1 }

</bundles_post_ra>
